<compile_context>
chip_gen: v6e
topology: v6e:2x2x1
jax: 0.10.0
libtpu: 0.0.40
codegen_flags: <defaults>
</compile_context>

<pallas_src>
import jax
import jax.numpy as jnp
from jax.experimental import pallas as pl
from jax.experimental.pallas import tpu as pltpu

IN_DIM, HID_DIM, OUT_DIM = 100, 50, 10


def _round_up(n, m):
    return ((n + m - 1) // m) * m


def mlp_kernel(x_ref, w1_ref, b1_ref, w2_ref, b2_ref, o_ref):
    # fc1: (tb, 100) @ (100, 50) -> f32 accumulate on the MXU.
    h = jnp.dot(x_ref[...], w1_ref[...], preferred_element_type=jnp.float32)
    # bias + ReLU in f32 on the VPU.
    h = jnp.maximum(h + b1_ref[...], 0.0)
    # fc2: (tb, 50) @ (50, 10) -> f32 accumulate. h never leaves VMEM/vregs.
    out = jnp.dot(h.astype(w2_ref.dtype), w2_ref[...],
                  preferred_element_type=jnp.float32)
    o_ref[...] = (out + b2_ref[...]).astype(o_ref.dtype)


def _choose_batch_tiling(batch, block_b, row_align):
    """Pick (tb, b_pad, n_steps): tb multiple of row_align, tb*n_steps = b_pad >= batch.

    Step count is kept even when >1 so the 2 TensorCores on v7x get balanced work.
    """
    b_al = _round_up(batch, row_align)
    if b_al <= block_b:
        return b_al, b_al, 1
    n_steps = -(-b_al // block_b)          # ceil
    if n_steps % 2:
        n_steps += 1                       # even step count -> balanced megacore split
    tb = _round_up(-(-b_al // n_steps), row_align)
    return tb, tb * n_steps, n_steps


def simple_model_forward(x, w1, b1, w2, b2, *, block_b=2048):
    """x: (B, 100); w1: (100, 50); b1: (1, 50); w2: (50, 10); b2: (1, 10) -> (B, 10) f32.

    Compute dtype of x / weights is whatever they arrive in (f32 or bf16); biases and
    accumulation are f32. No feature padding, no wrapper casts.
    """
    B = x.shape[0]
    assert x.shape[1] == IN_DIM

    # Sublane packing: 8 rows for 4-byte dtypes, 16 for 2-byte, 32 for 1-byte.
    row_align = max(8, 32 // jnp.dtype(x.dtype).itemsize)
    tb, b_pad, n_steps = _choose_batch_tiling(B, block_b, row_align)

    if b_pad != B:
        # Row-only zero padding (features stay at 100); padded rows sliced off below.
        x = jnp.pad(x, ((0, b_pad - B), (0, 0)))

    out = pl.pallas_call(
        mlp_kernel,
        out_shape=jax.ShapeDtypeStruct((b_pad, OUT_DIM), jnp.float32),
        grid_spec=pl.GridSpec(
            grid=(n_steps,),
            in_specs=[
                # x: tiled over batch -> double-buffered DMA overlaps compute.
                pl.BlockSpec((tb, IN_DIM), lambda i: (i, 0)),
                # Weights & biases: same (full-extent) block every step -> VMEM-resident.
                pl.BlockSpec((IN_DIM, HID_DIM), lambda i: (0, 0)),
                pl.BlockSpec((1, HID_DIM), lambda i: (0, 0)),
                pl.BlockSpec((HID_DIM, OUT_DIM), lambda i: (0, 0)),
                pl.BlockSpec((1, OUT_DIM), lambda i: (0, 0)),
            ],
            # True-width (tb, 10) output block: no padded 128-lane writeback + post-slice.
            out_specs=pl.BlockSpec((tb, OUT_DIM), lambda i: (i, 0)),
        ),
        compiler_params=pltpu.CompilerParams(
            # Independent batch tiles: shard across TensorCores (v7x megacore).
            dimension_semantics=("parallel",),
        ),
    )(x, w1, b1, w2, b2)

    return out if b_pad == B else out[:B]


# Jit the whole forward so the (tiny) row-pad / slice fold into one dispatch.
simple_model_forward_jit = jax.jit(simple_model_forward, static_argnames=("block_b",))


def init_params(key, dtype=jnp.float32):
    # Mimics PyTorch nn.Linear default init U(-1/sqrt(fan_in), 1/sqrt(fan_in)),
    # stored as (in, out) (transposed vs torch). Biases stay f32.
    k1, k2, k3, k4 = jax.random.split(key, 4)
    bound1 = 1.0 / jnp.sqrt(IN_DIM)
    bound2 = 1.0 / jnp.sqrt(HID_DIM)
    w1 = jax.random.uniform(k1, (IN_DIM, HID_DIM), jnp.float32, -bound1, bound1)
    b1 = jax.random.uniform(k2, (1, HID_DIM), jnp.float32, -bound1, bound1)
    w2 = jax.random.uniform(k3, (HID_DIM, OUT_DIM), jnp.float32, -bound2, bound2)
    b2 = jax.random.uniform(k4, (1, OUT_DIM), jnp.float32, -bound2, bound2)
    return w1.astype(dtype), b1, w2.astype(dtype), b2


if __name__ == "__main__":
    key = jax.random.PRNGKey(0)
    kx, kp, kx2 = jax.random.split(key, 3)

    w1, b1, w2, b2 = init_params(kp, jnp.float32)

    def ref_forward(xx, ww1, bb1, ww2, bb2):
        return jnp.maximum(xx.astype(jnp.float32) @ ww1.astype(jnp.float32) + bb1,
                           0.0) @ ww2.astype(jnp.float32) + bb2

    # Tolerance covers possible bf16-pass MXU rounding on either side of the compare.
    TOL = dict(atol=2e-2, rtol=2e-2)

    # --- Small batch (single grid step), f32 end to end. ---
    B = 8
    x = jax.random.normal(kx, (B, IN_DIM), jnp.float32)
    out = simple_model_forward_jit(x, w1, b1, w2, b2)
    jax.block_until_ready(out)
    ref = ref_forward(x, w1, b1, w2, b2)
    assert out.shape == (B, OUT_DIM)
    assert jnp.allclose(out, ref, **TOL)

    # --- Multi-step grid (even step count) with row padding: B=1000 -> 4 tiles of 256. ---
    B2 = 1000
    x2 = jax.random.normal(kx2, (B2, IN_DIM), jnp.float32)
    out2 = simple_model_forward_jit(x2, w1, b1, w2, b2, block_b=256)
    jax.block_until_ready(out2)
    ref2 = ref_forward(x2, w1, b1, w2, b2)
    assert out2.shape == (B2, OUT_DIM)
    assert jnp.allclose(out2, ref2, **TOL)

    # --- bf16 path: only when data already arrives in bf16 (no wrapper cast pass). ---
    x2_bf16 = x2.astype(jnp.bfloat16)
    w1b, b1b, w2b, b2b = init_params(kp, jnp.bfloat16)
    out_bf16 = simple_model_forward_jit(x2_bf16, w1b, b1b, w2b, b2b)
    jax.block_until_ready(out_bf16)
    assert out_bf16.shape == (B2, OUT_DIM)
    assert jnp.allclose(out_bf16, ref2, atol=5e-2, rtol=5e-2)

    print("KERNEL_OK")
</pallas_src>

<mosaic_0001>
module attributes {stable_mosaic.version = 11 : i64} {
  func.func @mlp_kernel(%arg0: i32, %arg1: memref<8x100xf32, #tpu.memory_space<vmem>>, %arg2: memref<100x50xf32, #tpu.memory_space<vmem>>, %arg3: memref<1x50xf32, #tpu.memory_space<vmem>>, %arg4: memref<50x10xf32, #tpu.memory_space<vmem>>, %arg5: memref<1x10xf32, #tpu.memory_space<vmem>>, %arg6: memref<8x10xf32, #tpu.memory_space<vmem>>) attributes {dimension_semantics = [#tpu.dimension_semantics<parallel>], iteration_bounds = array<i64: 1>, scalar_prefetch = 0 : i64, scratch_operands = 0 : i64, tpu.core_type = #tpu.core_type<tc>, window_params = [{transform_indices = @transform_0, window_bounds = array<i64: 8, 100>}, {pipeline_mode = #tpu.pipeline_mode<synchronous>, transform_indices = @transform_1, window_bounds = array<i64: 100, 50>}, {pipeline_mode = #tpu.pipeline_mode<synchronous>, transform_indices = @transform_2, window_bounds = array<i64: 1, 50>}, {pipeline_mode = #tpu.pipeline_mode<synchronous>, transform_indices = @transform_3, window_bounds = array<i64: 50, 10>}, {pipeline_mode = #tpu.pipeline_mode<synchronous>, transform_indices = @transform_4, window_bounds = array<i64: 1, 10>}, {transform_indices = @transform_5, window_bounds = array<i64: 8, 10>}]} {
    %c0 = arith.constant 0 : index
    %c0_0 = arith.constant 0 : index
    %0 = vector.load %arg1[%c0, %c0_0] : memref<8x100xf32, #tpu.memory_space<vmem>>, vector<8x100xf32>
    %c0_1 = arith.constant 0 : index
    %c0_2 = arith.constant 0 : index
    %1 = vector.load %arg2[%c0_1, %c0_2] : memref<100x50xf32, #tpu.memory_space<vmem>>, vector<100x50xf32>
    %cst = arith.constant dense<0.000000e+00> : vector<8x50xf32>
    %2 = tpu.matmul %0, %1, %cst {dimension_numbers = #tpu.dot_dimension_numbers<[1], [0], [0], [1], [0, 0, 1, 1], [], []>} : vector<8x100xf32>, vector<100x50xf32>, vector<8x50xf32> -> vector<8x50xf32>
    %c0_3 = arith.constant 0 : index
    %c0_4 = arith.constant 0 : index
    %3 = vector.load %arg3[%c0_3, %c0_4] : memref<1x50xf32, #tpu.memory_space<vmem>>, vector<1x50xf32>
    %4 = vector.broadcast %3 : vector<1x50xf32> to vector<8x50xf32>
    %5 = arith.addf %2, %4 : vector<8x50xf32>
    %cst_5 = arith.constant 0.000000e+00 : f32
    %6 = vector.broadcast %cst_5 : f32 to vector<8x50xf32>
    %7 = arith.maximumf %5, %6 : vector<8x50xf32>
    %c0_6 = arith.constant 0 : index
    %c0_7 = arith.constant 0 : index
    %8 = vector.load %arg4[%c0_6, %c0_7] : memref<50x10xf32, #tpu.memory_space<vmem>>, vector<50x10xf32>
    %cst_8 = arith.constant dense<0.000000e+00> : vector<8x10xf32>
    %9 = tpu.matmul %7, %8, %cst_8 {dimension_numbers = #tpu.dot_dimension_numbers<[1], [0], [0], [1], [0, 0, 1, 1], [], []>} : vector<8x50xf32>, vector<50x10xf32>, vector<8x10xf32> -> vector<8x10xf32>
    %c0_9 = arith.constant 0 : index
    %c0_10 = arith.constant 0 : index
    %10 = vector.load %arg5[%c0_9, %c0_10] : memref<1x10xf32, #tpu.memory_space<vmem>>, vector<1x10xf32>
    %11 = vector.broadcast %10 : vector<1x10xf32> to vector<8x10xf32>
    %12 = arith.addf %9, %11 : vector<8x10xf32>
    %c0_11 = arith.constant 0 : index
    %c0_12 = arith.constant 0 : index
    %13 = vector.load %arg6[%c0_11, %c0_12] : memref<8x10xf32, #tpu.memory_space<vmem>>, vector<8x10xf32>
    tpu.vector_store %arg6[%c0_11, %c0_12], %12 {strides = array<i32>} : memref<8x10xf32, #tpu.memory_space<vmem>>, vector<8x10xf32>,
    return
  }
  func.func @transform_0(%arg0: i32) -> (i32, i32) {
    %c0_i32 = arith.constant 0 : i32
    %c0_i32_0 = arith.constant 0 : i32
    return %arg0, %c0_i32 : i32, i32
  }
  func.func @transform_1(%arg0: i32) -> (i32, i32) {
    %c0_i32 = arith.constant 0 : i32
    %c0_i32_0 = arith.constant 0 : i32
    %c0_i32_1 = arith.constant 0 : i32
    return %c0_i32, %c0_i32_0 : i32, i32
  }
  func.func @transform_2(%arg0: i32) -> (i32, i32) {
    %c0_i32 = arith.constant 0 : i32
    %c0_i32_0 = arith.constant 0 : i32
    %c0_i32_1 = arith.constant 0 : i32
    return %c0_i32, %c0_i32_0 : i32, i32
  }
  func.func @transform_3(%arg0: i32) -> (i32, i32) {
    %c0_i32 = arith.constant 0 : i32
    %c0_i32_0 = arith.constant 0 : i32
    %c0_i32_1 = arith.constant 0 : i32
    return %c0_i32, %c0_i32_0 : i32, i32
  }
  func.func @transform_4(%arg0: i32) -> (i32, i32) {
    %c0_i32 = arith.constant 0 : i32
    %c0_i32_0 = arith.constant 0 : i32
    %c0_i32_1 = arith.constant 0 : i32
    return %c0_i32, %c0_i32_0 : i32, i32
  }
  func.func @transform_5(%arg0: i32) -> (i32, i32) {
    %c0_i32 = arith.constant 0 : i32
    %c0_i32_0 = arith.constant 0 : i32
    return %arg0, %c0_i32 : i32, i32
  }
}

</mosaic_0001>

<bundles_post_ra>
// kernel: simple_model_forward.1
= control target key start
LH: loop header
LB: loop body
LE: loop exit
PB: predicated region body
PF: predicated region fallthrough
CT: control target
= control target key end

     0   :  { %vm46_vm0 = vcmask 1043456   ;;  %v328_v1 = vmov 0.0   ;;  %vm329_vm1 = vmmov 0   ;;  %vm139_vm2 = vcmask 1041408   ;;  %s455_s0 = inlined_call_operand.vmem [shape: f32[8,100], index: 0, kind: input, shape index: {}]   ;;  %s456_s1 = inlined_call_operand.vmem [shape: f32[100,50], index: 1, kind: input, shape index: {}]   ;;  %s457_s2 = inlined_call_operand.vmem [shape: f32[1,50], index: 2, kind: input, shape index: {}]   ;;  %s458_s3 = inlined_call_operand.vmem [shape: f32[50,10], index: 3, kind: input, shape index: {}]   ;;  %s459_s4 = inlined_call_operand.vmem [shape: f32[1,10], index: 4, kind: input, shape index: {}]   ;;  %s460_s5 = inlined_call_operand.hbm [shape: f32[8,10], index: 5, kind: output, shape index: {}]  }
   0x1   :  { %v34_v0 = vld [vmem:[%s456_s1 + $0x60] sm:$0xf]  ;;  %257 = vmatprep.subr.mxu0 %v328_v1  ;;  %v33_v2 = vld [vmem:[%s456_s1 + $0x58] sm:$0xff]  ;;  %286 = vmatprep.subr.mxu1 %v328_v1  ;;  %v32_v3 = vld [vmem:[%s456_s1 + $0x50] sm:$0xff] }
   0x2   :  { %258 = vmatpush3.msk.msra.mxu0 %vm46_vm0, %v34_v0  ;;  %283 = vmatprep.mubr.msk.f32.mxu0 %vm329_vm1, %v328_v1  ;;  %v127_v4 = vld [vmem:[%s458_s3 + $0x30] sm:$0x3]  ;;  %v31_v5 = vld [vmem:[%s456_s1 + $0x48] sm:$0xff]  ;;  %v125_v7 = vld [vmem:[%s458_s3 + $0x20] sm:$0xff] }
   0x3   :  { %259 = vmatprep.subr.mxu0 %v328_v1  ;;  %300 = vmatprep.mubr.msk.f32.mxu1 %vm329_vm1, %v328_v1  ;;  %v126_v6 = vld [vmem:[%s458_s3 + $0x28] sm:$0xff] }
   0x4   :  { %260 = vmatpush3.msra.mxu0 %v33_v2  ;;  %287 = vmatpush3.msk.msra.mxu1 %vm139_vm2, %v127_v4 }
   0x5   :  { %261 = vmatprep.subr.mxu0 %v328_v1  ;;  %288 = vmatprep.subr.mxu1 %v328_v1 }
   0x6   :  { %262 = vmatpush3.msra.mxu0 %v32_v3 }
   0x7   :  { %10 = vsyncpa [#allocation3], 0  ;;  %263 = vmatprep.subr.mxu0 %v328_v1  ;;  %v30_v8 = vld [vmem:[%s456_s1 + $0x40] sm:$0xff]  ;;  %289 = vmatpush3.msra.mxu1 %v126_v6  ;;  %v124_v9 = vld [vmem:[%s458_s3 + $0x18] sm:$0xff]  ;;  %vm42_vm3 = vcmask 818176   ;;  %vm135_vm4 = vcmask 408576  }
   0x8   :  { %264 = vmatpush3.msra.mxu0 %v31_v5  ;;  %290 = vmatprep.subr.mxu1 %v328_v1  ;;  %v29_v10 = vld [vmem:[%s456_s1 + $0x38] sm:$0xff]  ;;  %v28_v11 = vld [vmem:[%s456_s1 + $0x30] sm:$0xff]  ;;  %v27_v12 = vld [vmem:[%s456_s1 + $0x28] sm:$0xff]  ;;  %s330_s12 = smov [#allocation2]   ;;  %vm213_vm5 = vcmask 80896  }
   0x9   :  { %265 = vmatprep.subr.mxu0 %v328_v1  ;;  %291 = vmatpush3.msra.mxu1 %v125_v7  ;;  %v26_v13 = vld [vmem:[%s456_s1 + $0x20] sm:$0xff]  ;;  %v25_v14 = vld [vmem:[%s456_s1 + $0x18] sm:$0xff]  ;;  %v24_v15 = vld [vmem:[%s456_s1 + $0x10] sm:$0xff]  ;;  %s221_s13 = sshll.u32 %s330_s12, 4  ;;  %s222_s13 = int_to_ptr.vmem [resolvable:$true] %s221_s13 }
   0xa   :  { %266 = vmatpush3.msra.mxu0 %v30_v8  ;;  %292 = vmatprep.subr.mxu1 %v328_v1  ;;  %v23_v16 = vld [vmem:[%s456_s1 + $0x8] sm:$0xff]  ;;  %v22_v17 = vld [vmem:[%s456_s1] sm:$0xff]  ;;  %v123_v19 = vld [vmem:[%s458_s3 + $0x10] sm:$0xff]  ;;  %p311_p1 = scmp.lt.s32.totalorder %s222_s13, %s222_s13 }
   0xb   :  { %267 = vmatprep.subr.mxu0 %v328_v1  ;;  %293 = vmatpush3.msra.mxu1 %v124_v9  ;;  %v21_v18 = vld [vmem:[%s455_s0] sm:$0xff]  ;;  %v122_v20 = vld [vmem:[%s458_s3 + $0x8] sm:$0xff] }
   0xc   :  { %268 = vmatpush3.msra.mxu0 %v29_v10  ;;  %294 = vmatprep.subr.mxu1 %v328_v1  ;;  %v121_v21 = vld [vmem:[%s458_s3] sm:$0xff]  ;;  %s306_s3 = scalar_lea.vmem %s222_s13, 128 }
   0xd   :  { %269 = vmatprep.subr.mxu0 %v328_v1  ;;  %295 = vmatpush3.msra.mxu1 %v123_v19  ;;  %v229_v22 = vld [vmem:[%s457_s2] ss:$0 sm:$0xff]  ;;  %p307_p0 = scmp.ne.s32.totalorder %s222_s13, %s306_s3  ;;  %p312_p2 = scmp.lt.s32.totalorder %s306_s3, %s306_s3 }
   0xe   :  { %270 = vmatpush3.msra.mxu0 %v28_v11  ;;  %296 = vmatprep.subr.mxu1 %v328_v1  ;;  %v232_v27 = vld [vmem:[%s459_s4] ss:$0 sm:$0xff] }
   0xf   :  { %271 = vmatprep.subr.mxu0 %v328_v1  ;;  %297 = vmatpush3.msra.mxu1 %v122_v20  ;;  %p313_p3 = por %p312_p2, %p311_p1 }
  0x10   :  { %272 = vmatpush3.msra.mxu0 %v27_v12  ;;  %298 = vmatprep.subr.mxu1 %v328_v1 }
  0x11   :  { %273 = vmatprep.subr.mxu0 %v328_v1  ;;  %299 = vmatpush3.msra.mxu1 %v121_v21  ;;  %p314_p4 = pnand %p313_p3, %p307_p0 }
  0x12   :  { %274 = vmatpush3.msra.mxu0 %v26_v13 }
  0x13   :  { %275 = vmatprep.subr.mxu0 %v328_v1 }
  0x14   :  { %276 = vmatpush3.msra.mxu0 %v25_v14 }
  0x15   :  { %277 = vmatprep.subr.mxu0 %v328_v1 }
  0x16   :  { %278 = vmatpush3.msra.mxu0 %v24_v15 }
  0x17   :  { %279 = vmatprep.subr.mxu0 %v328_v1 }
  0x18   :  { %280 = vmatpush3.msra.mxu0 %v23_v16 }
  0x19   :  { %281 = vmatprep.subr.mxu0 %v328_v1 }
  0x1a   :  { %282 = vmatpush3.msra.mxu0 %v22_v17 }
  0x1b   :  { %284 = vmatmul.mubr.msk.f32.vlgmr.msra.gmra.mxu0 %vm42_vm3, %v21_v18 }
  0xdb   :  { %v116_v23 = vpop.f32.mrf.mxu0 }
  0xdc   :  { %v117_v24 = vadd.f32 %v229_v22, %v116_v23 }
  0xdd   :  { %v285_v25 = vpop.f32.mrf.mxu0 }
  0xde   :  { %v120_v26 = vmax.f32 %v117_v24, 0.0 }
  0xe0   :  { %301 = vmatmul.mubr.msk.f32.vlgmr.msra.gmra.mxu1 %vm135_vm4, %v120_v26 }
 0x1a0   :  { %v209_v28 = vpop.f32.mrf.mxu1 }
 0x1a1   :  { %v210_v29 = vadd.f32 %v232_v27, %v209_v28 }
 0x1a2   :  { %v302_v30 = vpop.f32.mrf.mxu1 }
 0x1a3   :  { %214 = vst.msk [vmem:[#allocation2] sm:$0xff] %vm213_vm5, %v210_v29 }
 0x1a4   :  { %317 = shalt.err (!%p314_p4)
}
 0x1a5   :  { %224 = dma.vmem_to_hbm [thread:$0]  %s222_s13, 128, %s460_s5, [#allocation3]  }
 0x1a6   :  { %326 = dma.done.wait [#allocation3], 128  }
 0x1a7   :  { %327 = vsyncadd [#allocation3], 4294967168 }
 0x1a8   :  { %228 = vsyncpa [#allocation3], 1 }

</bundles_post_ra>
